<compile_context>
chip_gen: v5e
topology: v5e:2x2
jax: 0.10.0
libtpu: 0.0.40
codegen_flags: <defaults>
</compile_context>

<pallas_src>
import jax
import jax.numpy as jnp
from jax.experimental import pallas as pl
from jax.experimental.pallas import tpu as pltpu


def _round_up(x, m):
    return (x + m - 1) // m * m


def _pick_row_tile(n8, max_tile):
    """Pick a row tile (multiple of 8) that:
       * keeps the grid >= 2 steps when possible (v7x megacore sharding),
       * keeps grid-padding waste <= ~12.5% of N (no 2x blowup on N=520),
       * is as large as possible to amortize the ~0.35us per-grid-step cost.
    """
    if n8 <= 16:
        return 8
    cap = min(max_tile, _round_up(-(-n8 // 2), 8))   # ensures >= 2 grid steps
    cap = max(cap, 8)
    rt = cap
    while rt > 8:
        waste = _round_up(n8, rt) - n8
        if waste * 8 <= n8:                          # <= 12.5% padded rows
            return rt
        rt = max(8, (rt // 2) // 8 * 8)
    return 8


def _vmem_bytes(rt, f_in, f_out, h_isz, w_isz, out_isz):
    # double-buffered h and out tiles + (conservatively double-buffered)
    # resident W and bias.
    return (2 * rt * f_in * h_isz
            + 2 * rt * f_out * out_isz
            + 2 * f_in * f_out * w_isz
            + 2 * f_out * 4)


def _fused_linear_kernel(h_ref, w_ref, b_ref, o_ref):
    # Single MXU matmul; cast h in-register to the weight dtype (bf16 path),
    # accumulate in f32, add bias in f32.
    h = h_ref[...]
    if w_ref.dtype != h.dtype:
        h = h.astype(w_ref.dtype)
    acc = jnp.dot(h, w_ref[...], preferred_element_type=jnp.float32)
    o_ref[...] = (acc + b_ref[...]).astype(o_ref.dtype)


def fused_linear(h, w, b, *, row_tile=2048, use_bf16=True):
    """out = h @ w + b via a single row-tiled Pallas matmul."""
    N, f_in = h.shape
    f_out = w.shape[1]
    out_dtype = h.dtype

    # Weights / bias are tiny; cast once in the wrapper. h is NOT cast here
    # (it stays f32 in HBM and is cast on the VPU inside the kernel).
    compute_dtype = jnp.bfloat16 if use_bf16 else h.dtype
    w = w.astype(compute_dtype)
    b = b.astype(jnp.float32)

    h_isz = jnp.dtype(h.dtype).itemsize
    w_isz = jnp.dtype(w.dtype).itemsize
    out_isz = jnp.dtype(out_dtype).itemsize

    # Minimal row padding (to a multiple of 8), adaptive row tile.
    n8 = _round_up(N, 8)
    rt = _pick_row_tile(n8, row_tile)

    # Explicit VMEM budget, conservative for v7x (64 MiB physical).
    VMEM_BUDGET = 40 << 20
    while rt > 8 and _vmem_bytes(rt, f_in, f_out, h_isz, w_isz, out_isz) > VMEM_BUDGET:
        rt = max(8, (rt // 2) // 8 * 8)

    n_p = _round_up(n8, rt)
    if n_p != N:
        h = jnp.pad(h, ((0, n_p - N), (0, 0)))   # skipped entirely when aligned

    grid = (n_p // rt,)
    cost = pl.CostEstimate(
        flops=2 * n_p * f_in * f_out,
        transcendentals=0,
        bytes_accessed=(
            n_p * f_in * h_isz
            + f_in * f_out * w_isz
            + f_out * 4
            + n_p * f_out * out_isz
        ),
    )
    vmem_need = _vmem_bytes(rt, f_in, f_out, h_isz, w_isz, out_isz)
    vmem_limit = int(min(48 << 20, max(vmem_need + (2 << 20), 16 << 20)))

    out = pl.pallas_call(
        _fused_linear_kernel,
        out_shape=jax.ShapeDtypeStruct((n_p, f_out), out_dtype),
        grid_spec=pltpu.PrefetchScalarGridSpec(
            num_scalar_prefetch=0,
            grid=grid,
            in_specs=[
                pl.BlockSpec((rt, f_in), lambda i: (i, 0)),      # h rows (f32)
                pl.BlockSpec((f_in, f_out), lambda i: (0, 0)),   # W_fused (resident)
                pl.BlockSpec((1, f_out), lambda i: (0, 0)),      # b_fused (resident)
            ],
            # Full-width (unpadded) output block: last dim equals the full
            # array dim, so no junk columns are written and no column-slice
            # pass is needed afterwards.
            out_specs=pl.BlockSpec((rt, f_out), lambda i: (i, 0)),
        ),
        compiler_params=pltpu.CompilerParams(
            # Row tiles are independent -> shard across TCs (v7x megacore).
            dimension_semantics=("parallel",),
            vmem_limit_bytes=vmem_limit,
        ),
        cost_estimate=cost,
    )(h, w, b)
    return out if n_p == N else out[:N]


def fuse_params(wg_all, wa_all, b_all, wgate, bgate):
    """Collapse the two linear stages into one affine map (exact f32 algebra)."""
    w_fused = (wg_all + wa_all) @ wgate          # [in_feats, out_feats]
    b_fused = b_all @ wgate + bgate              # [1, out_feats]
    return w_fused, b_fused


def msmp_forward(h, wg_all, wa_all, b_all, wgate, bgate,
                 *, row_tile=2048, use_bf16=True):
    w_fused, b_fused = fuse_params(wg_all, wa_all, b_all, wgate, bgate)
    return fused_linear(h, w_fused, b_fused, row_tile=row_tile, use_bf16=use_bf16)


def init_params(key, in_feats, out_feats, num_heads):
    """Deterministic synthetic parameters matching nn.Linear shapes.

    PyTorch nn.Linear(in, out): weight [out, in], bias [out].
    Stored already transposed & stacked: column block i = head i.
    """
    keys = jax.random.split(key, 4 * num_heads + 2)
    scale = 1.0 / jnp.sqrt(in_feats)
    wg_list, bg_list, wa_list, ba_list = [], [], [], []
    for i in range(num_heads):
        wg_list.append(jax.random.uniform(keys[4 * i + 0], (in_feats, out_feats),
                                          jnp.float32, -scale, scale))
        bg_list.append(jax.random.uniform(keys[4 * i + 1], (out_feats,),
                                          jnp.float32, -scale, scale))
        wa_list.append(jax.random.uniform(keys[4 * i + 2], (in_feats, out_feats),
                                          jnp.float32, -scale, scale))
        ba_list.append(jax.random.uniform(keys[4 * i + 3], (out_feats,),
                                          jnp.float32, -scale, scale))
    wg_all = jnp.concatenate(wg_list, axis=1)             # [in, H*out]
    wa_all = jnp.concatenate(wa_list, axis=1)             # [in, H*out]
    b_all = (jnp.concatenate(bg_list)
             + jnp.concatenate(ba_list)).reshape(1, -1)   # [1, H*out]
    gscale = 1.0 / jnp.sqrt(num_heads * out_feats)
    wgate = jax.random.uniform(keys[-2], (num_heads * out_feats, out_feats),
                               jnp.float32, -gscale, gscale)
    bgate = jax.random.uniform(keys[-1], (out_feats,),
                               jnp.float32, -gscale, gscale).reshape(1, -1)
    return wg_all, wa_all, b_all, wgate, bgate


def reference_forward(h, wg_all, wa_all, b_all, wgate, bgate):
    """Unfused two-stage reference (mirrors the PyTorch forward)."""
    multi = h @ wg_all + h @ wa_all + b_all
    return multi @ wgate + bgate


if __name__ == "__main__":
    key = jax.random.PRNGKey(0)
    k_h, k_p, k_h2, k_p2 = jax.random.split(key, 4)

    # --- Case 1: canonical small shapes ------------------------------------
    num_nodes = 64          # N (graph nodes)
    in_feats = 32
    out_feats = 32
    num_heads = 4

    h = jax.random.normal(k_h, (num_nodes, in_feats), jnp.float32)
    params = init_params(k_p, in_feats, out_feats, num_heads)

    # The graph `g` is unused by the PyTorch forward, so no graph input.
    ref_exact = reference_forward(h, *params)
    w_fused, b_fused = fuse_params(*params)
    ref_fused_f32 = h @ w_fused + b_fused

    # f32 path: kernel fidelity vs the same fused affine map, plus a check
    # against the original unfused two-stage reference.
    out_f32 = jax.block_until_ready(msmp_forward(h, *params, use_bf16=False))
    assert out_f32.shape == (num_nodes, out_feats)
    assert jnp.allclose(out_f32, ref_fused_f32, atol=1e-4, rtol=1e-4)
    assert jnp.allclose(out_f32, ref_exact, atol=1e-3, rtol=1e-3)

    # bf16 path (default, MXU-native): tight check against a bf16-consistent
    # reference, loose check against the exact f32 reference.
    out_bf16 = jax.block_until_ready(msmp_forward(h, *params))
    ref_bf16 = (h.astype(jnp.bfloat16).astype(jnp.float32)
                @ w_fused.astype(jnp.bfloat16).astype(jnp.float32)) + b_fused
    assert out_bf16.shape == (num_nodes, out_feats)
    assert jnp.allclose(out_bf16, ref_bf16, atol=1e-3, rtol=1e-3)
    assert jnp.allclose(out_bf16, ref_exact, atol=5e-2, rtol=5e-2)

    # --- Case 2: odd shapes to exercise the adaptive tiling / padding path --
    h2 = jax.random.normal(k_h2, (200, 48), jnp.float32)
    params2 = init_params(k_p2, 48, 24, 3)
    w2, b2 = fuse_params(*params2)
    out2 = jax.block_until_ready(msmp_forward(h2, *params2, use_bf16=False))
    assert out2.shape == (200, 24)
    assert jnp.allclose(out2, h2 @ w2 + b2, atol=1e-4, rtol=1e-4)
    assert jnp.allclose(out2, reference_forward(h2, *params2), atol=1e-3, rtol=1e-3)

    print("KERNEL_OK")
</pallas_src>

<mosaic_0001>
module attributes {stable_mosaic.version = 11 : i64} {
  func.func @_fused_linear_kernel(%arg0: i32, %arg1: memref<32x32xf32, #tpu.memory_space<vmem>>, %arg2: memref<32x32xf32, #tpu.memory_space<vmem>>, %arg3: memref<1x32xf32, #tpu.memory_space<vmem>>, %arg4: memref<32x32xf32, #tpu.memory_space<vmem>>) attributes {dimension_semantics = [#tpu.dimension_semantics<parallel>], iteration_bounds = array<i64: 2>, scalar_prefetch = 0 : i64, scratch_operands = 0 : i64, tpu.core_type = #tpu.core_type<tc>, window_params = [{transform_indices = @transform_0, window_bounds = array<i64: 32, 32>}, {pipeline_mode = #tpu.pipeline_mode<synchronous>, transform_indices = @transform_1, window_bounds = array<i64: 32, 32>}, {pipeline_mode = #tpu.pipeline_mode<synchronous>, transform_indices = @transform_2, window_bounds = array<i64: 1, 32>}, {transform_indices = @transform_3, window_bounds = array<i64: 32, 32>}]} {
    %c0 = arith.constant 0 : index
    %c0_0 = arith.constant 0 : index
    %0 = vector.load %arg1[%c0, %c0_0] : memref<32x32xf32, #tpu.memory_space<vmem>>, vector<32x32xf32>
    %c0_1 = arith.constant 0 : index
    %c0_2 = arith.constant 0 : index
    %1 = vector.load %arg2[%c0_1, %c0_2] : memref<32x32xf32, #tpu.memory_space<vmem>>, vector<32x32xf32>
    %cst = arith.constant dense<0.000000e+00> : vector<32x32xf32>
    %2 = tpu.matmul %0, %1, %cst {dimension_numbers = #tpu.dot_dimension_numbers<[1], [0], [0], [1], [0, 0, 1, 1], [], []>} : vector<32x32xf32>, vector<32x32xf32>, vector<32x32xf32> -> vector<32x32xf32>
    %c0_3 = arith.constant 0 : index
    %c0_4 = arith.constant 0 : index
    %3 = vector.load %arg3[%c0_3, %c0_4] : memref<1x32xf32, #tpu.memory_space<vmem>>, vector<1x32xf32>
    %4 = vector.broadcast %3 : vector<1x32xf32> to vector<32x32xf32>
    %5 = arith.addf %2, %4 : vector<32x32xf32>
    %c0_5 = arith.constant 0 : index
    %c0_6 = arith.constant 0 : index
    %6 = vector.load %arg4[%c0_5, %c0_6] : memref<32x32xf32, #tpu.memory_space<vmem>>, vector<32x32xf32>
    tpu.vector_store %arg4[%c0_5, %c0_6], %5 {strides = array<i32>} : memref<32x32xf32, #tpu.memory_space<vmem>>, vector<32x32xf32>,
    return
  }
  func.func @transform_0(%arg0: i32) -> (i32, i32) {
    %c0_i32 = arith.constant 0 : i32
    %c0_i32_0 = arith.constant 0 : i32
    return %arg0, %c0_i32 : i32, i32
  }
  func.func @transform_1(%arg0: i32) -> (i32, i32) {
    %c0_i32 = arith.constant 0 : i32
    %c0_i32_0 = arith.constant 0 : i32
    %c0_i32_1 = arith.constant 0 : i32
    return %c0_i32, %c0_i32_0 : i32, i32
  }
  func.func @transform_2(%arg0: i32) -> (i32, i32) {
    %c0_i32 = arith.constant 0 : i32
    %c0_i32_0 = arith.constant 0 : i32
    %c0_i32_1 = arith.constant 0 : i32
    return %c0_i32, %c0_i32_0 : i32, i32
  }
  func.func @transform_3(%arg0: i32) -> (i32, i32) {
    %c0_i32 = arith.constant 0 : i32
    %c0_i32_0 = arith.constant 0 : i32
    return %arg0, %c0_i32 : i32, i32
  }
}

</mosaic_0001>

<bundles_post_ra>
// kernel: tpu_custom_call.1
= control target key start
LH: loop header
LB: loop body
LE: loop exit
PB: predicated region body
PF: predicated region fallthrough
CT: control target
= control target key end

     0   :  { %s352_s12 = smov 0   ;;  %s392_s0 = inlined_call_operand.vmem [shape: f32[64,32], index: 0, kind: input, shape index: {}]   ;;  %s393_s1 = inlined_call_operand.vmem [shape: f32[32,32], index: 1, kind: input, shape index: {}]   ;;  %s394_s2 = inlined_call_operand.vmem [shape: f32[1,32], index: 2, kind: input, shape index: {}]   ;;  %s395_s3 = inlined_call_operand.vmem [shape: f32[64,32], index: 3, kind: output, shape index: {}]  }
   0x1 LB: > { %s288_s13 = sadd.s32 4294967295, %s330_s12   ;;  %p292_p0 = scmp.ge.s32.totalorder %s330_s12, 1  ;;  %s330_s12 = sphi %s352_s12, %s13_s12  }
   0x2   : > { %p138_p1 = scmp.lt.s32.totalorder %s330_s12, 3 }
   0x4   : > { %p139_p2 = pnand %p292_p0, %p138_p1 }
   0x5   : > { %s293_s18 = sshll.u32 (!%p139_p2), %s288_s13, 2 }
   0x6   : > { %142 = sbr.rel (%p139_p2) target bundleno = 155 (0x9b), region = 32  ;;  %p163_p3 = scmp.lt.s32.totalorder (!%p139_p2), %s293_s18, 7 }
   0xb   : > { %v181_v0 = vld [vmem:[%s393_s1 + $0x18] sm:$0xff]  ;;  %v180_v1 = vld [vmem:[%s393_s1 + $0x10] sm:$0xff]  ;;  %v179_v2 = vld [vmem:[%s393_s1 + $0x8] sm:$0xff]  ;;  %s397_s18 = smov (!%p163_p3, %s293_s18), 7  ;;  %vm186_vm0 = vcmask 261120  }
   0xc   : > { %304 = vmatpush.msra.mxu2 %v181_v0  ;;  %305 = vmatpush.msra.mxu3 %v181_v0  ;;  %v178_v3 = vld [vmem:[%s393_s1] sm:$0xff]  ;;  %s294_s23 = sshll.u32 %s397_s18, 3 }
   0xd   : > { %211 = vmatpush.msra.mxu0 %v181_v0  ;;  %303 = vmatpush.msra.mxu1 %v181_v0  ;;  %s166_s26 = scalar_lea.vmem %s392_s0, %s294_s23  ;;  %v323_v8 = vld [vmem:[%s394_s2] ss:$0 sm:$0xff]  ;;  %s172_s4 = scalar_lea.vmem %s395_s3, %s294_s23 }
   0xe   : > { %307 = vmatpush.msra.mxu2 %v180_v1  ;;  %308 = vmatpush.msra.mxu3 %v180_v1  ;;  %v176_v4 = vld [vmem:[%s166_s26 + $0x10] sm:$0xff]  ;;  %v177_v5 = vld [vmem:[%s166_s26 + $0x18] sm:$0xff]  ;;  %v174_v6 = vld [vmem:[%s166_s26] sm:$0xff] }
   0xf   : > { %212 = vmatpush.msra.mxu0 %v180_v1  ;;  %306 = vmatpush.msra.mxu1 %v180_v1  ;;  %v175_v7 = vld [vmem:[%s166_s26 + $0x8] sm:$0xff] }
  0x10   : > { %310 = vmatpush.msra.mxu2 %v179_v2  ;;  %311 = vmatpush.msra.mxu3 %v179_v2 }
  0x11   : > { %213 = vmatpush.msra.mxu0 %v179_v2  ;;  %309 = vmatpush.msra.mxu1 %v179_v2 }
  0x12   : > { %313 = vmatpush.msra.mxu2 %v178_v3  ;;  %314 = vmatpush.msra.mxu3 %v178_v3 }
  0x13   : > { %299 = vmatmul.msk.f32.vlgmr.msra.gmra.mxu2 %vm186_vm0, %v176_v4  ;;  %300 = vmatmul.msk.f32.vlgmr.msra.gmra.mxu3 %vm186_vm0, %v177_v5 }
  0x14   : > { %214 = vmatpush.msra.mxu0 %v178_v3  ;;  %312 = vmatpush.msra.mxu1 %v178_v3 }
  0x15   : > { %297 = vmatmul.msk.f32.vlgmr.msra.gmra.mxu0 %vm186_vm0, %v174_v6  ;;  %298 = vmatmul.msk.f32.vlgmr.msra.gmra.mxu1 %vm186_vm0, %v175_v7 }
  0x92   : > { %v216_v9 = vpop.f32.mrf.mxu0  ;;  %v219_v10 = vpop.f32.mrf.mxu1 }
  0x93   : > { %v217_v11 = vadd.f32 %v323_v8, %v216_v9  ;;  %v220_v12 = vadd.f32 %v323_v8, %v219_v10 }
  0x95   : > { %228 = vst.msk [vmem:[%s172_s4] sm:$0xff] %vm186_vm0, %v217_v11 }
  0x96   : > { %229 = vst.msk [vmem:[%s172_s4 + $0x8] sm:$0xff] %vm186_vm0, %v220_v12  ;;  %v222_v13 = vpop.f32.mrf.mxu2  ;;  %v225_v14 = vpop.f32.mrf.mxu3 }
  0x97   : > { %v223_v15 = vadd.f32 %v323_v8, %v222_v13  ;;  %v226_v16 = vadd.f32 %v323_v8, %v225_v14 }
  0x99   : > { %230 = vst.msk [vmem:[%s172_s4 + $0x10] sm:$0xff] %vm186_vm0, %v223_v15 }
  0x9a   : > { %231 = vst.msk [vmem:[%s172_s4 + $0x18] sm:$0xff] %vm186_vm0, %v226_v16 }
  0x9b PF: > { %s13_s12 = sadd.s32 1, %s330_s12  }
  0x9c   : > { %p10_p4 = scmp.ge.s32.totalorder %s13_s12, 4  }
  0x9e   :  { %12 = sbr.rel (!%p10_p4) target bundleno = 1 (0x1), region = 62 }

</bundles_post_ra>
